<compile_context>
chip_gen: v5e
topology: v5e:2x2
jax: 0.10.0
libtpu: 0.0.40
codegen_flags: <defaults>
</compile_context>

<pallas_src>
import functools

import jax
import jax.numpy as jnp
from jax.experimental import pallas as pl
from jax.experimental.pallas import tpu as pltpu


def _block_a_kernel(x_ref, w_ref, b0_ref, b1_ref, o_ref):
    # x @ W  (f32 accumulation on the MXU)
    h = jnp.dot(x_ref[...], w_ref[...], preferred_element_type=jnp.float32)
    # + bias0, ReLU, + bias1   (biases are (1, out_dim) -> broadcast over rows)
    h = jnp.maximum(h + b0_ref[...], 0.0)
    o_ref[...] = (h + b1_ref[...]).astype(o_ref.dtype)


def _round_up(n: int, m: int) -> int:
    return ((n + m - 1) // m) * m


@functools.partial(jax.jit, static_argnames=("row_tile",))
def block_a_forward(x, weight, bias0, bias1, *, row_tile: int = 512):
    """BlockA forward.

    x:      (B, in_dim)  float32
    weight: (in_dim, out_dim) float32
    bias0:  (1, out_dim) float32   (Bias module 0)
    bias1:  (1, out_dim) float32   (Bias module 1)
    returns (B, out_dim) float32
    """
    B, in_dim = x.shape
    out_dim = weight.shape[1]

    # Row tile: large batches use `row_tile`; small batches use one
    # sublane-aligned tile covering the whole (padded) batch.
    if B >= row_tile:
        tile = row_tile
    else:
        tile = max(8, _round_up(B, 8))
    b_pad = _round_up(B, tile)
    if b_pad != B:
        x = jnp.pad(x, ((0, b_pad - B), (0, 0)))

    grid = (b_pad // tile,)

    x_spec = pl.BlockSpec((tile, in_dim), lambda i: (i, 0))
    w_spec = pl.BlockSpec((in_dim, out_dim), lambda i: (0, 0))   # VMEM-resident
    b_spec = pl.BlockSpec((1, out_dim), lambda i: (0, 0))        # VMEM-resident
    o_spec = pl.BlockSpec((tile, out_dim), lambda i: (i, 0))

    itemsize = jnp.dtype(jnp.float32).itemsize
    cost = pl.CostEstimate(
        flops=2 * b_pad * in_dim * out_dim + 3 * b_pad * out_dim,
        transcendentals=0,
        bytes_accessed=itemsize * (b_pad * in_dim          # x
                                   + in_dim * out_dim      # W
                                   + 2 * out_dim           # biases
                                   + b_pad * out_dim),     # out
    )

    out = pl.pallas_call(
        _block_a_kernel,
        out_shape=jax.ShapeDtypeStruct((b_pad, out_dim), jnp.float32),
        grid=grid,
        in_specs=[x_spec, w_spec, b_spec, b_spec],
        out_specs=o_spec,
        compiler_params=pltpu.CompilerParams(
            dimension_semantics=("parallel",)),
        cost_estimate=cost,
    )(x, weight, bias0, bias1)

    return out[:B] if b_pad != B else out


def _reference(x, weight, bias0, bias1):
    return jnp.maximum(x @ weight + bias0, 0.0) + bias1


if __name__ == "__main__":
    key = jax.random.PRNGKey(0)
    kx, kw, kb0, kb1, kx2 = jax.random.split(key, 5)

    # Small shapes consistent with BlockA(in_dim, out_dim): batch=8, 16 -> 32.
    B, in_dim, out_dim = 8, 16, 32
    x = jax.random.normal(kx, (B, in_dim), jnp.float32)
    weight = jax.random.normal(kw, (in_dim, out_dim), jnp.float32)   # torch.randn-style
    bias0 = jax.random.normal(kb0, (1, out_dim), jnp.float32)
    bias1 = jax.random.normal(kb1, (1, out_dim), jnp.float32)

    out = jax.block_until_ready(block_a_forward(x, weight, bias0, bias1))
    ref = _reference(x, weight, bias0, bias1)
    assert out.shape == (B, out_dim), out.shape
    assert jnp.allclose(out, ref, atol=1e-5, rtol=1e-5), "small-batch mismatch"

    # Exercise the batched / multi-step grid path (weights stay resident).
    B2 = 1024
    x2 = jax.random.normal(kx2, (B2, in_dim), jnp.float32)
    out2 = jax.block_until_ready(block_a_forward(x2, weight, bias0, bias1))
    ref2 = _reference(x2, weight, bias0, bias1)
    assert out2.shape == (B2, out_dim), out2.shape
    assert jnp.allclose(out2, ref2, atol=1e-5, rtol=1e-5), "batched mismatch"

    print("KERNEL_OK")
</pallas_src>

<mosaic_0001>
module attributes {stable_mosaic.version = 11 : i64} {
  func.func @_block_a_kernel(%arg0: i32, %arg1: memref<8x16xf32, #tpu.memory_space<vmem>>, %arg2: memref<16x32xf32, #tpu.memory_space<vmem>>, %arg3: memref<1x32xf32, #tpu.memory_space<vmem>>, %arg4: memref<1x32xf32, #tpu.memory_space<vmem>>, %arg5: memref<8x32xf32, #tpu.memory_space<vmem>>) attributes {dimension_semantics = [#tpu.dimension_semantics<parallel>], iteration_bounds = array<i64: 1>, scalar_prefetch = 0 : i64, scratch_operands = 0 : i64, tpu.core_type = #tpu.core_type<tc>, window_params = [{transform_indices = @transform_0, window_bounds = array<i64: 8, 16>}, {pipeline_mode = #tpu.pipeline_mode<synchronous>, transform_indices = @transform_1, window_bounds = array<i64: 16, 32>}, {pipeline_mode = #tpu.pipeline_mode<synchronous>, transform_indices = @transform_2, window_bounds = array<i64: 1, 32>}, {pipeline_mode = #tpu.pipeline_mode<synchronous>, transform_indices = @transform_3, window_bounds = array<i64: 1, 32>}, {transform_indices = @transform_4, window_bounds = array<i64: 8, 32>}]} {
    %c0 = arith.constant 0 : index
    %c0_0 = arith.constant 0 : index
    %0 = vector.load %arg1[%c0, %c0_0] : memref<8x16xf32, #tpu.memory_space<vmem>>, vector<8x16xf32>
    %c0_1 = arith.constant 0 : index
    %c0_2 = arith.constant 0 : index
    %1 = vector.load %arg2[%c0_1, %c0_2] : memref<16x32xf32, #tpu.memory_space<vmem>>, vector<16x32xf32>
    %cst = arith.constant dense<0.000000e+00> : vector<8x32xf32>
    %2 = tpu.matmul %0, %1, %cst {dimension_numbers = #tpu.dot_dimension_numbers<[1], [0], [0], [1], [0, 0, 1, 1], [], []>} : vector<8x16xf32>, vector<16x32xf32>, vector<8x32xf32> -> vector<8x32xf32>
    %c0_3 = arith.constant 0 : index
    %c0_4 = arith.constant 0 : index
    %3 = vector.load %arg3[%c0_3, %c0_4] : memref<1x32xf32, #tpu.memory_space<vmem>>, vector<1x32xf32>
    %4 = vector.broadcast %3 : vector<1x32xf32> to vector<8x32xf32>
    %5 = arith.addf %2, %4 : vector<8x32xf32>
    %cst_5 = arith.constant 0.000000e+00 : f32
    %6 = vector.broadcast %cst_5 : f32 to vector<8x32xf32>
    %7 = arith.maximumf %5, %6 : vector<8x32xf32>
    %c0_6 = arith.constant 0 : index
    %c0_7 = arith.constant 0 : index
    %8 = vector.load %arg4[%c0_6, %c0_7] : memref<1x32xf32, #tpu.memory_space<vmem>>, vector<1x32xf32>
    %9 = vector.broadcast %8 : vector<1x32xf32> to vector<8x32xf32>
    %10 = arith.addf %7, %9 : vector<8x32xf32>
    %c0_8 = arith.constant 0 : index
    %c0_9 = arith.constant 0 : index
    %11 = vector.load %arg5[%c0_8, %c0_9] : memref<8x32xf32, #tpu.memory_space<vmem>>, vector<8x32xf32>
    tpu.vector_store %arg5[%c0_8, %c0_9], %10 {strides = array<i32>} : memref<8x32xf32, #tpu.memory_space<vmem>>, vector<8x32xf32>,
    return
  }
  func.func @transform_0(%arg0: i32) -> (i32, i32) {
    %c0_i32 = arith.constant 0 : i32
    %c0_i32_0 = arith.constant 0 : i32
    return %arg0, %c0_i32 : i32, i32
  }
  func.func @transform_1(%arg0: i32) -> (i32, i32) {
    %c0_i32 = arith.constant 0 : i32
    %c0_i32_0 = arith.constant 0 : i32
    %c0_i32_1 = arith.constant 0 : i32
    return %c0_i32, %c0_i32_0 : i32, i32
  }
  func.func @transform_2(%arg0: i32) -> (i32, i32) {
    %c0_i32 = arith.constant 0 : i32
    %c0_i32_0 = arith.constant 0 : i32
    %c0_i32_1 = arith.constant 0 : i32
    return %c0_i32, %c0_i32_0 : i32, i32
  }
  func.func @transform_3(%arg0: i32) -> (i32, i32) {
    %c0_i32 = arith.constant 0 : i32
    %c0_i32_0 = arith.constant 0 : i32
    %c0_i32_1 = arith.constant 0 : i32
    return %c0_i32, %c0_i32_0 : i32, i32
  }
  func.func @transform_4(%arg0: i32) -> (i32, i32) {
    %c0_i32 = arith.constant 0 : i32
    %c0_i32_0 = arith.constant 0 : i32
    return %arg0, %c0_i32 : i32, i32
  }
}

</mosaic_0001>

<bundles_post_ra>
// kernel: block_a_forward.1
= control target key start
LH: loop header
LB: loop body
LE: loop exit
PB: predicated region body
PF: predicated region fallthrough
CT: control target
= control target key end

     0   :  { %9 = vsyncpa [#allocation3], 0  ;;  %s236_s0 = inlined_call_operand.hbm [shape: f32[8,16], index: 0, kind: input, shape index: {}]   ;;  %s237_s1 = inlined_call_operand.hbm [shape: f32[16,32], index: 1, kind: input, shape index: {}]   ;;  %s238_s2 = inlined_call_operand.vmem [shape: f32[1,32], index: 2, kind: input, shape index: {}]   ;;  %s239_s3 = inlined_call_operand.vmem [shape: f32[1,32], index: 3, kind: input, shape index: {}]   ;;  %s240_s4 = inlined_call_operand.hbm [shape: f32[8,32], index: 4, kind: output, shape index: {}]  }
   0x1   :  { %10 = vsyncpa [#allocation6], 0 }
   0x2   :  { %11 = vsyncpa [#allocation4], 0  ;;  %s17_s17 = sshll.u32 %s236_s0, 4  ;;  %s191_s18 = smov [#allocation2]   ;;  %s18_s17 = int_to_ptr.hbm [resolvable:$true] %s17_s17 }
   0x3   :  { %s19_s19 = sshll.u32 %s191_s18, 4  ;;  %s27_s22 = sshll.u32 %s237_s1, 4  ;;  %s20_s19 = int_to_ptr.vmem [resolvable:$true] %s19_s19  ;;  %s28_s22 = int_to_ptr.hbm [resolvable:$true] %s27_s22 }
   0x4   :  { %22 = dma.hbm_to_vmem [thread:$0]  %s18_s17, 128, %s20_s19, [#allocation3]  }
   0x5   :  { %s192_s23 = smov [#allocation5]   ;;  %s193_s25 = smov 128  }
   0x6   :  { %s29_s24 = sshll.u32 %s192_s23, 4  ;;  %s194_s26 = smov 8   ;;  %s30_s24 = int_to_ptr.vmem [resolvable:$true] %s29_s24 }
   0x7   :  { %35 = dma.hbm_to_vmem [thread:$0]  %s28_s22, 256, %s30_s24, [#allocation6], %s193_s25, %s193_s25, %s194_s26  }
   0x8   :  { %185 = dma.done.wait [#allocation3], 128  }
   0x9   :  { %186 = vsyncadd [#allocation3], 4294967168 }
   0xa   :  { %187 = dma.done.wait [#allocation6], 256  }
   0xb   :  { %188 = vsyncadd [#allocation6], 4294967040  ;;  %v50_v0 = vld [vmem:[#allocation5 + $0x8] sm:$0xff]  ;;  %v49_v1 = vld [vmem:[#allocation5] sm:$0xff]  ;;  %vm55_vm0 = vcmask 130048   ;;  %s195_s29 = smov [#allocation7]  }
   0xc   :  { %73 = vmatpush.msra.mxu0 %v50_v0  ;;  %v48_v2 = vld [vmem:[#allocation2] sm:$0xff]  ;;  %s92_s30 = sshll.u32 %s195_s29, 4  ;;  %s94_s7 = sshll.u32 %s240_s4, 4  ;;  %vm85_vm1 = vcmask 261120   ;;  %s93_s30 = int_to_ptr.vmem [resolvable:$true] %s92_s30  ;;  %s95_s7 = int_to_ptr.hbm [resolvable:$true] %s94_s7 }
   0xd   :  { %v111_v3 = vld [vmem:[%s238_s2] ss:$0 sm:$0xff] }
   0xe   :  { %74 = vmatpush.msra.mxu0 %v49_v1  ;;  %v112_v6 = vld [vmem:[%s239_s3] ss:$0 sm:$0xff] }
   0xf   :  { %105 = vmatmul.msk.f32.vlgmr.msra.gmra.mxu0 %vm55_vm0, %v48_v2 }
  0x8c   :  { %v76_v4 = vpop.f32.mrf.mxu0 }
  0x8d   :  { %v77_v5 = vadd.f32 %v111_v3, %v76_v4 }
  0x8f   :  { %v79_v7 = vmax.f32 %v77_v5, 0.0 }
  0x91   :  { %v84_v8 = vadd.f32 %v112_v6, %v79_v7 }
  0x93   :  { %86 = vst.msk [vmem:[#allocation7] sm:$0xff] %vm85_vm1, %v84_v8 }
  0x94   :  { %97 = dma.vmem_to_hbm [thread:$0]  %s93_s30, 128, %s95_s7, [#allocation4]  }
  0x95   :  { %189 = dma.done.wait [#allocation4], 128  }
  0x96   :  { %190 = vsyncadd [#allocation4], 4294967168 }
  0x97   :  { %102 = vsyncpa [#allocation3], 1 }
  0x98   :  { %103 = vsyncpa [#allocation6], 1 }
  0x99   :  { %104 = vsyncpa [#allocation4], 1 }

</bundles_post_ra>
